<compile_context>
chip_gen: v5e
topology: v5e:2x2
jax: 0.10.0
libtpu: 0.0.40
codegen_flags: <defaults>
</compile_context>

<pallas_src>
import functools

import jax
import jax.numpy as jnp
from jax import lax
from jax.experimental import pallas as pl
from jax.experimental.pallas import tpu as pltpu


def _alpha_loss_kernel(a_ref, g_ref, out_ref, *, chunk_n, num_chunks):
    """One grid step over (block_n, H, W) native-dtype tiles.

    Writes the three partial sums (|d|, |sobel_x(d)|, |sobel_y(d)|) for this
    block into a (1, 3) f32 SMEM output block.
    """

    def body(c, carry):
        s1, s2, s3 = carry
        start = pl.multiple_of(c * chunk_n, chunk_n)
        sl = pl.ds(start, chunk_n)
        # Stream native dtype; upcast in VMEM; accumulate in f32.
        d = (a_ref[sl, :, :].astype(jnp.float32)
             - g_ref[sl, :, :].astype(jnp.float32))
        _, H, W = d.shape

        # Shared H-shifted operands for both (separable) Sobel filters.
        d0 = d[:, 0:H - 2, :]
        d2 = d[:, 2:H, :]
        vs = d0 + 2.0 * d[:, 1:H - 1, :] + d2      # [1,2,1]^T smooth along H
        vd = d0 - d2                                # [1,0,-1]^T diff  along H
        # sobel_x = [1,2,1]^T (x) [1,0,-1] ; sobel_y = [1,0,-1]^T (x) [1,2,1]
        sx = vs[:, :, 0:W - 2] - vs[:, :, 2:W]
        sy = vd[:, :, 0:W - 2] + 2.0 * vd[:, :, 1:W - 1] + vd[:, :, 2:W]

        s1 = s1 + jnp.sum(jnp.abs(d))
        s2 = s2 + jnp.sum(jnp.abs(sx))
        s3 = s3 + jnp.sum(jnp.abs(sy))
        return s1, s2, s3

    zero = jnp.float32(0.0)
    s1, s2, s3 = lax.fori_loop(0, num_chunks, body, (zero, zero, zero),
                               unroll=num_chunks <= 8)
    out_ref[0, 0] = s1
    out_ref[0, 1] = s2
    out_ref[0, 2] = s3


def _vmem_limit_bytes():
    """Generation-aware scoped-VMEM limit (75% of physical per-core VMEM)."""
    try:
        cap = pltpu.get_tpu_info().vmem_capacity_bytes
    except Exception:
        cap = 64 * 1024 * 1024  # conservative fallback: v7x per-TensorCore
    return int(cap * 0.75)


def _plan_tiling(n, h, w, itemsize, vmem_limit):
    """Pick (block_n, chunk_n): DMA block size and inner compute chunk size."""
    per_image_native = max(1, h * w * itemsize)
    per_image_f32 = h * w * 4
    # f32 temporaries per compute chunk: d, d0/d2 slice copies, vs, vd, sx, sy
    # (slices may materialize) ~ 8x the f32 chunk.
    temps_per_image = 8 * per_image_f32

    # Images per inner compute iteration (bounds the f32 working set).
    compute_budget = 8 * 1024 * 1024
    chunk_n = max(1, min(n, compute_budget // temps_per_image))

    # DMA block: 2 inputs x 2 pipeline buffers (native dtype) + chunk temps
    # must fit under the scoped-VMEM limit with headroom; keep each per-input
    # block in the 4-12 MiB HBM-roofline sweet spot.
    usable = int(vmem_limit * 0.8) - chunk_n * temps_per_image
    per_input_cap = min(12 * 1024 * 1024,
                        max(per_image_native, max(usable, 0) // 4))
    block_n = max(chunk_n, min(n, per_input_cap // per_image_native))
    block_n = max(chunk_n, (block_n // chunk_n) * chunk_n)
    return block_n, chunk_n


def alpha_loss(alpha, alpha_ground, *, block_n=None):
    """alpha, alpha_ground: [N, 1, H, W]. Returns scalar f32 loss."""
    assert alpha.shape == alpha_ground.shape
    N, C, H, W = alpha.shape
    assert C == 1, "sobel conv weight is [1,1,3,3] -> single channel"
    assert H > 2 and W > 2, "valid 3x3 conv needs H,W > 2"

    a = jnp.reshape(alpha, (N, H, W))
    g = jnp.reshape(alpha_ground, (N, H, W))
    itemsize = jnp.dtype(a.dtype).itemsize

    vmem_limit = _vmem_limit_bytes()
    auto_block_n, chunk_n = _plan_tiling(N, H, W, itemsize, vmem_limit)
    if block_n is None:
        block_n = auto_block_n
    else:
        chunk_n = max(1, min(chunk_n, block_n))
        while block_n % chunk_n != 0:
            chunk_n -= 1
    num_chunks = block_n // chunk_n

    # Pad N up to a multiple of block_n; zero images contribute 0 to every
    # partial sum, and the denominators below use the true N, so this is exact.
    num_blocks = (N + block_n - 1) // block_n
    n_pad = num_blocks * block_n
    if n_pad != N:
        a = jnp.pad(a, ((0, n_pad - N), (0, 0), (0, 0)))
        g = jnp.pad(g, ((0, n_pad - N), (0, 0), (0, 0)))

    kernel = functools.partial(_alpha_loss_kernel,
                               chunk_n=chunk_n, num_chunks=num_chunks)

    cost = pl.CostEstimate(
        flops=int(20 * n_pad * H * W),
        transcendentals=0,
        bytes_accessed=int(2 * n_pad * H * W * itemsize + num_blocks * 3 * 4),
    )

    partials = pl.pallas_call(
        kernel,
        out_shape=jax.ShapeDtypeStruct((num_blocks, 3), jnp.float32),
        grid=(num_blocks,),
        in_specs=[
            pl.BlockSpec((block_n, H, W), lambda i: (i, 0, 0)),
            pl.BlockSpec((block_n, H, W), lambda i: (i, 0, 0)),
        ],
        out_specs=pl.BlockSpec((1, 3), lambda i: (i, 0),
                               memory_space=pltpu.MemorySpace.SMEM),
        compiler_params=pltpu.CompilerParams(
            dimension_semantics=("parallel",),
            vmem_limit_bytes=vmem_limit),
        cost_estimate=cost,
    )(a, g)

    # Tiny final combine in the wrapper (keeps the kernel free of captured
    # constants and lets the N axis be fully parallel).
    sums = jnp.sum(partials, axis=0)
    inv1 = 1.0 / float(N * H * W)
    inv2 = 1.0 / float(N * (H - 2) * (W - 2))
    return sums[0] * inv1 + (sums[1] + sums[2]) * inv2


def _alpha_loss_ref(alpha, alpha_ground):
    """Pure-JAX reference (lax conv) for a sanity check."""
    a = jnp.squeeze(alpha, 1).astype(jnp.float32)
    g = jnp.squeeze(alpha_ground, 1).astype(jnp.float32)
    kx = jnp.array([[1, 0, -1], [2, 0, -2], [1, 0, -1]], jnp.float32)
    ky = jnp.array([[1, 2, 1], [0, 0, 0], [-1, -2, -1]], jnp.float32)

    def conv(x, k):
        return jax.lax.conv_general_dilated(
            x[:, None], k[None, None], (1, 1), "VALID",
            dimension_numbers=("NCHW", "OIHW", "NCHW"))[:, 0]

    l1 = jnp.mean(jnp.abs(a - g))
    l2x = jnp.mean(jnp.abs(conv(a, kx) - conv(g, kx)))
    l2y = jnp.mean(jnp.abs(conv(a, ky) - conv(g, ky)))
    return l1 + l2x + l2y


if __name__ == "__main__":
    key = jax.random.PRNGKey(0)
    k1, k2, k3, k4 = jax.random.split(key, 4)

    N, C, H, W = 2, 1, 16, 16
    alpha = jax.random.uniform(k1, (N, C, H, W), dtype=jnp.float32)
    alpha_ground = jax.random.uniform(k2, (N, C, H, W), dtype=jnp.float32)

    ref = _alpha_loss_ref(alpha, alpha_ground)

    # Default tiling (single grid step at this toy size).
    loss = alpha_loss(alpha, alpha_ground)
    jax.block_until_ready(loss)
    assert jnp.allclose(loss, ref, rtol=1e-5, atol=1e-5), (loss, ref)

    # Force a multi-step grid (exercises per-block partial outputs).
    loss_tiled = alpha_loss(alpha, alpha_ground, block_n=1)
    jax.block_until_ready(loss_tiled)
    assert jnp.allclose(loss_tiled, ref, rtol=1e-5, atol=1e-5), (loss_tiled, ref)

    # Ragged N handled by zero padding (N=3, block_n=2 -> one padded image).
    N2 = 3
    alpha2 = jax.random.uniform(k3, (N2, C, H, W), dtype=jnp.float32)
    alpha_ground2 = jax.random.uniform(k4, (N2, C, H, W), dtype=jnp.float32)
    ref2 = _alpha_loss_ref(alpha2, alpha_ground2)
    loss2 = alpha_loss(alpha2, alpha_ground2, block_n=2)
    jax.block_until_ready(loss2)
    assert jnp.allclose(loss2, ref2, rtol=1e-5, atol=1e-5), (loss2, ref2)

    print("KERNEL_OK")
</pallas_src>

<mosaic_0001>
module attributes {stable_mosaic.version = 11 : i64} {
  func.func @_alpha_loss_kernel(%arg0: i32, %arg1: memref<2x16x16xf32, #tpu.memory_space<vmem>>, %arg2: memref<2x16x16xf32, #tpu.memory_space<vmem>>, %arg3: memref<1x3xf32, #tpu.memory_space<smem>>) attributes {dimension_semantics = [#tpu.dimension_semantics<parallel>], iteration_bounds = array<i64: 1>, scalar_prefetch = 0 : i64, scratch_operands = 0 : i64, tpu.core_type = #tpu.core_type<tc>, window_params = [{transform_indices = @transform_0, window_bounds = array<i64: 2, 16, 16>}, {transform_indices = @transform_1, window_bounds = array<i64: 2, 16, 16>}, {transform_indices = @transform_2, window_bounds = array<i64: 1, 3>}]} {
    %cst = arith.constant 0.000000e+00 : f32
    %cst_0 = arith.constant 0.000000e+00 : f32
    %cst_1 = arith.constant 0.000000e+00 : f32
    %c0_i32 = arith.constant 0 : i32
    %c2_i32 = arith.constant 2 : i32
    %0 = arith.muli %c0_i32, %c2_i32 : i32
    %1 = tpu.assume_multiple %0, 2 : i32
    %2 = arith.index_cast %1 : i32 to index
    %c0 = arith.constant 0 : index
    %c0_2 = arith.constant 0 : index
    %3 = vector.load %arg1[%2, %c0, %c0_2] : memref<2x16x16xf32, #tpu.memory_space<vmem>>, vector<2x16x16xf32>
    %4 = arith.index_cast %1 : i32 to index
    %c0_3 = arith.constant 0 : index
    %c0_4 = arith.constant 0 : index
    %5 = vector.load %arg2[%4, %c0_3, %c0_4] : memref<2x16x16xf32, #tpu.memory_space<vmem>>, vector<2x16x16xf32>
    %6 = arith.subf %3, %5 : vector<2x16x16xf32>
    %7 = vector.extract_strided_slice %6 {offsets = [0, 0, 0], sizes = [2, 14, 16], strides = [1, 1, 1]} : vector<2x16x16xf32> to vector<2x14x16xf32>
    %8 = vector.extract_strided_slice %6 {offsets = [0, 2, 0], sizes = [2, 14, 16], strides = [1, 1, 1]} : vector<2x16x16xf32> to vector<2x14x16xf32>
    %9 = vector.extract_strided_slice %6 {offsets = [0, 1, 0], sizes = [2, 14, 16], strides = [1, 1, 1]} : vector<2x16x16xf32> to vector<2x14x16xf32>
    %cst_5 = arith.constant 2.000000e+00 : f32
    %10 = vector.broadcast %cst_5 : f32 to vector<2x14x16xf32>
    %11 = arith.mulf %10, %9 : vector<2x14x16xf32>
    %12 = arith.addf %7, %11 : vector<2x14x16xf32>
    %13 = arith.addf %12, %8 : vector<2x14x16xf32>
    %14 = arith.subf %7, %8 : vector<2x14x16xf32>
    %15 = vector.extract_strided_slice %13 {offsets = [0, 0, 0], sizes = [2, 14, 14], strides = [1, 1, 1]} : vector<2x14x16xf32> to vector<2x14x14xf32>
    %16 = vector.extract_strided_slice %13 {offsets = [0, 0, 2], sizes = [2, 14, 14], strides = [1, 1, 1]} : vector<2x14x16xf32> to vector<2x14x14xf32>
    %17 = arith.subf %15, %16 : vector<2x14x14xf32>
    %18 = vector.extract_strided_slice %14 {offsets = [0, 0, 0], sizes = [2, 14, 14], strides = [1, 1, 1]} : vector<2x14x16xf32> to vector<2x14x14xf32>
    %19 = vector.extract_strided_slice %14 {offsets = [0, 0, 1], sizes = [2, 14, 14], strides = [1, 1, 1]} : vector<2x14x16xf32> to vector<2x14x14xf32>
    %cst_6 = arith.constant 2.000000e+00 : f32
    %20 = vector.broadcast %cst_6 : f32 to vector<2x14x14xf32>
    %21 = arith.mulf %20, %19 : vector<2x14x14xf32>
    %22 = arith.addf %18, %21 : vector<2x14x14xf32>
    %23 = vector.extract_strided_slice %14 {offsets = [0, 0, 2], sizes = [2, 14, 14], strides = [1, 1, 1]} : vector<2x14x16xf32> to vector<2x14x14xf32>
    %24 = arith.addf %22, %23 : vector<2x14x14xf32>
    %25 = math.absf %6 : vector<2x16x16xf32>
    %26 = vector.shape_cast %25 : vector<2x16x16xf32> to vector<1x2x16x16xf32>
    %cst_7 = arith.constant dense<0.000000e+00> : vector<1xf32>
    %27 = vector.multi_reduction <add>, %26, %cst_7 [1, 2, 3] : vector<1x2x16x16xf32> to vector<1xf32>
    %28 = vector.shape_cast %27 : vector<1xf32> to vector<1x1x1x1xf32>
    %29 = vector.extract %28[0, 0, 0, 0] : f32 from vector<1x1x1x1xf32>
    %30 = arith.addf %cst, %29 : f32
    %31 = math.absf %17 : vector<2x14x14xf32>
    %32 = vector.shape_cast %31 : vector<2x14x14xf32> to vector<1x2x14x14xf32>
    %cst_8 = arith.constant dense<0.000000e+00> : vector<1xf32>
    %33 = vector.multi_reduction <add>, %32, %cst_8 [1, 2, 3] : vector<1x2x14x14xf32> to vector<1xf32>
    %34 = vector.shape_cast %33 : vector<1xf32> to vector<1x1x1x1xf32>
    %35 = vector.extract %34[0, 0, 0, 0] : f32 from vector<1x1x1x1xf32>
    %36 = arith.addf %cst_0, %35 : f32
    %37 = math.absf %24 : vector<2x14x14xf32>
    %38 = vector.shape_cast %37 : vector<2x14x14xf32> to vector<1x2x14x14xf32>
    %cst_9 = arith.constant dense<0.000000e+00> : vector<1xf32>
    %39 = vector.multi_reduction <add>, %38, %cst_9 [1, 2, 3] : vector<1x2x14x14xf32> to vector<1xf32>
    %40 = vector.shape_cast %39 : vector<1xf32> to vector<1x1x1x1xf32>
    %41 = vector.extract %40[0, 0, 0, 0] : f32 from vector<1x1x1x1xf32>
    %42 = arith.addf %cst_1, %41 : f32
    %c1_i32 = arith.constant 1 : i32
    %c0_10 = arith.constant 0 : index
    %c0_11 = arith.constant 0 : index
    %43 = memref.load %arg3[%c0_10, %c0_11] : memref<1x3xf32, #tpu.memory_space<smem>>
    memref.store %30, %arg3[%c0_10, %c0_11] : memref<1x3xf32, #tpu.memory_space<smem>>
    %c0_12 = arith.constant 0 : index
    %c1 = arith.constant 1 : index
    %44 = memref.load %arg3[%c0_12, %c1] : memref<1x3xf32, #tpu.memory_space<smem>>
    memref.store %36, %arg3[%c0_12, %c1] : memref<1x3xf32, #tpu.memory_space<smem>>
    %c0_13 = arith.constant 0 : index
    %c2 = arith.constant 2 : index
    %45 = memref.load %arg3[%c0_13, %c2] : memref<1x3xf32, #tpu.memory_space<smem>>
    memref.store %42, %arg3[%c0_13, %c2] : memref<1x3xf32, #tpu.memory_space<smem>>
    return
  }
  func.func @transform_0(%arg0: i32) -> (i32, i32, i32) {
    %c0_i32 = arith.constant 0 : i32
    %c0_i32_0 = arith.constant 0 : i32
    %c0_i32_1 = arith.constant 0 : i32
    return %arg0, %c0_i32, %c0_i32_0 : i32, i32, i32
  }
  func.func @transform_1(%arg0: i32) -> (i32, i32, i32) {
    %c0_i32 = arith.constant 0 : i32
    %c0_i32_0 = arith.constant 0 : i32
    %c0_i32_1 = arith.constant 0 : i32
    return %arg0, %c0_i32, %c0_i32_0 : i32, i32, i32
  }
  func.func @transform_2(%arg0: i32) -> (i32, i32) {
    %c0_i32 = arith.constant 0 : i32
    %c0_i32_0 = arith.constant 0 : i32
    return %arg0, %c0_i32 : i32, i32
  }
}

</mosaic_0001>

<bundles_post_ra>
// kernel: tpu_custom_call.1
= control target key start
LH: loop header
LB: loop body
LE: loop exit
PB: predicated region body
PF: predicated region fallthrough
CT: control target
= control target key end

     0   :  { %7 = vsyncpa [#allocation3], 0  ;;  %s400_s0 = inlined_call_operand.hbm [shape: f32[2,16,16], index: 0, kind: input, shape index: {}]   ;;  %s401_s1 = inlined_call_operand.hbm [shape: f32[2,16,16], index: 1, kind: input, shape index: {}]   ;;  %s402_s2 = inlined_call_operand.hbm [shape: f32[1,3], index: 2, kind: output, shape index: {}]  }
   0x1   :  { %8 = vsyncpa [#allocation6], 0 }
   0x2   :  { %9 = vsyncpa [#allocation4], 0  ;;  %s14_s11 = sshll.u32 %s400_s0, 4  ;;  %s337_s12 = smov [#allocation2]   ;;  %s15_s11 = int_to_ptr.hbm [resolvable:$true] %s14_s11 }
   0x3   :  { %s16_s13 = sshll.u32 %s337_s12, 4  ;;  %s27_s16 = sshll.u32 %s401_s1, 4  ;;  %s17_s13 = int_to_ptr.vmem [resolvable:$true] %s16_s13  ;;  %s28_s16 = int_to_ptr.hbm [resolvable:$true] %s27_s16 }
   0x4   :  { %s338_s17 = smov 128   ;;  %s339_s18 = smov 8  }
   0x5   :  { %22 = dma.hbm_to_vmem [thread:$0]  %s15_s11, 512, %s17_s13, [#allocation3], %s338_s17, %s338_s17, %s339_s18  }
   0x6   :  { %s340_s19 = smov [#allocation5]  }
   0x7   :  { %s29_s20 = sshll.u32 %s340_s19, 4  ;;  %s30_s20 = int_to_ptr.vmem [resolvable:$true] %s29_s20 }
   0x8   :  { %35 = dma.hbm_to_vmem [thread:$0]  %s28_s16, 512, %s30_s20, [#allocation6], %s338_s17, %s338_s17, %s339_s18  }
   0x9   :  { %331 = dma.done.wait [#allocation3], 512  }
   0xa   :  { %332 = vsyncadd [#allocation3], 4294966784 }
   0xb   :  { %333 = dma.done.wait [#allocation6], 512  }
   0xc   :  { %334 = vsyncadd [#allocation6], 4294966784  ;;  %v47_v0 = vld [vmem:[#allocation2 + $0x8] sm:$0xff]  ;;  %v46_v2 = vld [vmem:[#allocation2] sm:$0xff]  ;;  %vm86_vm0 = vcmask 1045504   ;;  %vm67_vm1 = vcmask 1046528  }
   0xd   :  { %v52_v1 = vld [vmem:[#allocation5 + $0x8] sm:$0xff]  ;;  %v51_v4 = vld [vmem:[#allocation5] sm:$0xff]  ;;  %v48_v5 = vld [vmem:[#allocation2 + $0x10] sm:$0xff]  ;;  %s341_s0 = smov 126   ;;  %s342_s1 = smov 127   ;;  %vm173_vm2 = vcmask 130048  }
   0xe   :  { %v365_v3 = vsub.f32 %v47_v0, %v52_v1  ;;  %v49_v6 = vld [vmem:[#allocation2 + $0x18] sm:$0xff]  ;;  %v55_v7 = vsub.f32 %v46_v2, %v51_v4  ;;  %v53_v8 = vld [vmem:[#allocation5 + $0x10] sm:$0xff]  ;;  %vm195_vm3 = vcmask 113664   ;;  %vm197_vm4 = vcmask 111616   ;;  %s246_s24 = sshll.u32 %s402_s2, 4  ;;  %s343_s27 = smov [#allocation7]   ;;  %s247_s24 = int_to_ptr.hbm [resolvable:$true] %s246_s24 }
   0xf   :  { %v54_v9 = vld [vmem:[#allocation5 + $0x18] sm:$0xff]  ;;  %v57_v14 = vsub.f32 %v48_v5, %v53_v8 }
  0x10   :  { %v88_v10 = vrot.slane %v365_v3, 2  ;;  %v60_v11 = vmul.f32 2.0, %v365_v3  ;;  %v59_v12 = vmul.f32 2.0, %v55_v7  ;;  %v87_v13 = vrot.slane %v55_v7, 2 }
  0x11   :  { %v58_v15 = vsub.f32 %v49_v6, %v54_v9  ;;  %v61_v24 = vmul.f32 2.0, %v57_v14  ;;  %v90_v33 = vrot.slane %v57_v14, 2  ;;  %v169_v44 = vand.u32 2147483647, %v55_v7 }
  0x12   :  { %v370_v16 = vsub.f32 %v365_v3, %v88_v10  ;;  %v69_v17 = vrot.slane %v60_v11, 1  ;;  %v68_v18 = vrot.slane %v59_v12, 1  ;;  %v89_v19 = vsel %vm86_vm0, %v87_v13, %v88_v10 }
  0x13   :  { %v91_v20 = vrot.slane %v58_v15, 2  ;;  %v101_v22 = vsub.f32 %v55_v7, %v89_v19  ;;  %v62_v25 = vmul.f32 2.0, %v58_v15  ;;  %v71_v30 = vrot.slane %v61_v24, 1 }
  0x14   :  { %155 = vrot.lane.b32.xlu0 %v370_v16, %s341_s0  ;;  %v79_v21 = vadd.f32 %v69_v17, %v365_v3  ;;  %v70_v23 = vsel %vm67_vm1, %v68_v18, %v69_v17  ;;  %v126_v28 = vmul.f32 2.0, %v370_v16  ;;  %v170_v45 = vand.u32 2147483647, %v365_v3 }
  0x15   :  { %153 = vrot.lane.b32.xlu2 %v101_v22, %s341_s0  ;;  %v104_v27 = vsub.f32 %v58_v15, %v91_v20  ;;  %v78_v29 = vadd.f32 %v70_v23, %v55_v7  ;;  %v72_v31 = vrot.slane %v62_v25, 1  ;;  %v92_v36 = vsel %vm86_vm0, %v90_v33, %v91_v20 }
  0x16   :  { %v377_v26 = vadd.f32 %v88_v10, %v79_v21  ;;  %v125_v37 = vmul.f32 2.0, %v101_v22  ;;  %v103_v39 = vsub.f32 %v57_v14, %v92_v36  ;;  %v171_v47 = vand.u32 2147483647, %v57_v14 }
  0x17   :  { %v128_v32 = vmul.f32 2.0, %v104_v27  ;;  %v97_v34 = vadd.f32 %v89_v19, %v78_v29  ;;  %v73_v35 = vsel %vm67_vm1, %v71_v30, %v72_v31  ;;  %v81_v42 = vadd.f32 %v72_v31, %v58_v15 }
  0x18   :  { %111 = vrot.lane.b32.xlu1 %v377_v26, %s341_s0  ;;  %v80_v38 = vadd.f32 %v73_v35, %v57_v14  ;;  %v127_v40 = vmul.f32 2.0, %v103_v39  ;;  %v174_v48 = vsel %vm173_vm2, %v169_v44, 0.0  ;;  %v175_v49 = vsel %vm173_vm2, %v170_v45, 0.0 }
  0x19   :  { %v100_v43 = vadd.f32 %v91_v20, %v81_v42  ;;  %v176_v50 = vadd.f32 %v175_v49, %v174_v48  ;;  %v172_v51 = vand.u32 2147483647, %v58_v15  ;;  %v177_v52 = vsel %vm173_vm2, %v171_v47, 0.0 }
  0x1a   :  { %v99_v41 = vadd.f32 %v92_v36, %v80_v38 }
  0x1b   :  { %v178_v53 = vadd.f32 %v177_v52, %v176_v50  ;;  %v179_v54 = vsel %vm173_vm2, %v172_v51, 0.0 }
  0x1c   :  { %135 = vrot.lane.b32.xlu0 %v126_v28, %s342_s1 }
  0x1d   :  { %139 = vrot.lane.b32.xlu2 %v128_v32, %s342_s1  ;;  %v180_v55 = vadd.f32 %v179_v54, %v178_v53 }
  0x20   :  { %109 = vrot.lane.b32.xlu1 %v97_v34, %s341_s0 }
  0x24   :  { %133 = vrot.lane.b32.xlu0 %v125_v37, %s342_s1 }
  0x25   :  { %137 = vrot.lane.b32.xlu2 %v127_v40, %s342_s1 }
  0x28   :  { %113 = vrot.lane.b32.xlu1 %v99_v41, %s341_s0 }
  0x2c   :  { %157 = vrot.lane.b32.xlu0 %v103_v39, %s341_s0 }
  0x2d   :  { %159 = vrot.lane.b32.xlu2 %v104_v27, %s341_s0 }
  0x30   :  { %115 = vrot.lane.b32.xlu1 %v100_v43, %s341_s0 }
  0x56   :  { %181 = vadd.xlane.f32.xlu0 %v180_v55 }
  0x6f   :  { %v154_v46 = vpop.permute.xlu2 %153 }
  0x77   :  { %v140_v56 = vpop.permute.xlu2 %139 }
  0x78   :  { %v148_v1 = vadd.f32 %v140_v56, %v104_v27 }
  0x7f   :  { %v138_v60 = vpop.permute.xlu2 %137 }
  0x80   :  { %v147_v10 = vadd.f32 %v138_v60, %v103_v39 }
  0x86   :  { %v156_v57 = vpop.permute.xlu0 %155 }
  0x87   :  { %v160_v5 = vpop.permute.xlu2 %159 }
  0x88   :  { %v168_v13 = vadd.f32 %v160_v5, %v148_v1 }
  0x8a   :  { %v112_v58 = vpop.permute.xlu1 %111  ;;  %v217_v21 = vand.u32 2147483647, %v168_v13 }
  0x8b   :  { %v122_v7 = vsub.f32 %v377_v26, %v112_v58 }
  0x8c   :  { %v223_v32 = vsel %vm197_vm4, %v217_v21, 0.0 }
  0x8d   :  { %v192_v15 = vand.u32 2147483647, %v122_v7 }
  0x8e   :  { %v136_v59 = vpop.permute.xlu0 %135 }
  0x8f   :  { %v146_v62 = vadd.f32 %v136_v59, %v370_v16  ;;  %v198_v25 = vsel %vm197_vm4, %v192_v15, 0.0 }
  0x91   :  { %v166_v2 = vadd.f32 %v156_v57, %v146_v62 }
  0x92   :  { %v110_v61 = vpop.permute.xlu1 %109 }
  0x93   :  { %v121_v3 = vsub.f32 %v97_v34, %v110_v61  ;;  %v215_v11 = vand.u32 2147483647, %v166_v2 }
  0x95   :  { %v191_v12 = vand.u32 2147483647, %v121_v3  ;;  %v219_v19 = vsel %vm197_vm4, %v215_v11, 0.0 }
  0x96   :  { %v134_v63 = vpop.permute.xlu0 %133 }
  0x97   :  { %v145_v0 = vadd.f32 %v134_v63, %v101_v22  ;;  %v196_v20 = vsel %vm195_vm3, %v191_v12, 0.0 }
  0x98   :  { %v199_v29 = vadd.f32 %v198_v25, %v196_v20 }
  0x99   :  { %v165_v4 = vadd.f32 %v154_v46, %v145_v0 }
  0x9a   :  { %v114_v6 = vpop.permute.xlu1 %113 }
  0x9b   :  { %v214_v8 = vand.u32 2147483647, %v165_v4  ;;  %v123_v9 = vsub.f32 %v99_v41, %v114_v6 }
  0x9d   :  { %v218_v16 = vsel %vm195_vm3, %v214_v8, 0.0  ;;  %v193_v17 = vand.u32 2147483647, %v123_v9 }
  0x9e   :  { %v158_v14 = vpop.permute.xlu0 %157  ;;  %v220_v24 = vadd.f32 %v219_v19, %v218_v16 }
  0x9f   :  { %v167_v18 = vadd.f32 %v158_v14, %v147_v10  ;;  %v200_v26 = vsel %vm195_vm3, %v193_v17, 0.0 }
  0xa0   :  { %v201_v34 = vadd.f32 %v200_v26, %v199_v29 }
  0xa1   :  { %v216_v22 = vand.u32 2147483647, %v167_v18 }
  0xa2   :  { %v116_v23 = vpop.permute.xlu1 %115 }
  0xa3   :  { %v221_v27 = vsel %vm195_vm3, %v216_v22, 0.0  ;;  %v124_v28 = vsub.f32 %v100_v43, %v116_v23 }
  0xa4   :  { %v222_v30 = vadd.f32 %v221_v27, %v220_v24 }
  0xa5   :  { %v194_v31 = vand.u32 2147483647, %v124_v28 }
  0xa6   :  { %v224_v33 = vadd.f32 %v223_v32, %v222_v30 }
  0xa7   :  { %v202_v35 = vsel %vm197_vm4, %v194_v31, 0.0 }
  0xa8   :  { %225 = vadd.xlane.f32.xlu2 %v224_v33  ;;  %v203_v36 = vadd.f32 %v202_v35, %v201_v34 }
  0xaa   :  { %204 = vadd.xlane.f32.xlu1 %v203_v36 }
  0xc9   :  { %v182_v37 = vpop.xlane.xlu0 %181 }
  0xca   :  { %v183_v38 = vrot.slane %v182_v37, 4 }
  0xcc   :  { %v184_v39 = vadd.f32 %v183_v38, %v182_v37 }
  0xce   :  { %v185_v40 = vrot.slane %v184_v39, 2 }
  0xd0   :  { %v186_v41 = vadd.f32 %v185_v40, %v184_v39 }
  0xd2   :  { %v187_v42 = vrot.slane %v186_v41, 1 }
  0xd4   :  { %v188_v44 = vadd.f32 %v187_v42, %v186_v41 }
  0xd6   :  { %258 = vpush %v188_v44 }
 0x107   :  { %s259_s21 = spop %258 }
 0x108   :  { %236 = sst [smem:[#allocation7]] %s259_s21 }
 0x11b   :  { %v226_v43 = vpop.xlane.xlu2 %225 }
 0x11c   :  { %v227_v45 = vrot.slane %v226_v43, 4 }
 0x11d   :  { %v205_v46 = vpop.xlane.xlu1 %204 }
 0x11e   :  { %v228_v47 = vadd.f32 %v227_v45, %v226_v43  ;;  %v206_v48 = vrot.slane %v205_v46, 4 }
 0x120   :  { %v229_v49 = vrot.slane %v228_v47, 2  ;;  %v207_v50 = vadd.f32 %v206_v48, %v205_v46 }
 0x122   :  { %v230_v51 = vadd.f32 %v229_v49, %v228_v47  ;;  %v208_v52 = vrot.slane %v207_v50, 2 }
 0x124   :  { %v209_v53 = vadd.f32 %v208_v52, %v207_v50  ;;  %v231_v54 = vrot.slane %v230_v51, 1 }
 0x126   :  { %v210_v55 = vrot.slane %v209_v53, 1  ;;  %v232_v57 = vadd.f32 %v231_v54, %v230_v51 }
 0x128   :  { %v211_v56 = vadd.f32 %v210_v55, %v209_v53 }
 0x12a   :  { %260 = vpush %v211_v56 }
 0x12b   :  { %262 = vpush %v232_v57 }
 0x15b   :  { %s261_s25 = spop %260 }
 0x15c   :  { %238 = sst [smem:[#allocation7 + $0x1]] %s261_s25  ;;  %s263_s26 = spop %262 }
 0x15d   :  { %240 = sst [smem:[#allocation7 + $0x2]] %s263_s26 }
 0x15e   :  { %249 = dma.smem_to_hbm %s343_s27, 16, %s247_s24, [#allocation4]  }
 0x15f   :  { %335 = dma.done.wait [#allocation4], 16  }
 0x160   :  { %336 = vsyncadd [#allocation4], 4294967280 }
 0x161   :  { %254 = sfence }
 0x162   :  { %255 = vsyncpa [#allocation3], 1 }
 0x163   :  { %256 = vsyncpa [#allocation6], 1 }
 0x164   :  { %257 = vsyncpa [#allocation4], 1 }

</bundles_post_ra>
